<compile_context>
chip_gen: v7x
topology: tpu7x:2x2x1
jax: 0.10.0
libtpu: 0.0.40
codegen_flags: <defaults>
</compile_context>

<pallas_src>
import jax
import jax.numpy as jnp
from jax.experimental import pallas as pl
from jax.experimental.pallas import tpu as pltpu


# --------------------------------------------------------------------------- kernel
def _resgraphconv_kernel(x_ref,
                         w1_ref, a1t_ref, d1_ref, b1_ref,
                         a2t_ref, d2_ref, w2_ref, b2_ref,
                         out_ref):
    tb, n, din = x_ref.shape          # batch block, nodes, input features
    h2 = w1_ref.shape[1]              # 2 * (hid_dim // 2)
    h = h2 // 2                       # hid_dim // 2  (== n by module construction)
    dout = w2_ref.shape[1]            # output features (== din)

    x = x_ref[...]                                                     # (tb, n, din) f32

    # ---------------- gconv1: fused weight matmul (bf16 operands, f32 accumulate) ----
    # r1[b, i, :h] = h0[b, i, :],  r1[b, i, h:] = h1[b, i, :]
    r1 = jnp.dot(x.reshape(tb * n, din).astype(jnp.bfloat16), w1_ref[...],
                 preferred_element_type=jnp.float32).reshape(tb, n, h2)
    rT = jnp.swapaxes(r1, 1, 2)                                        # (tb, 2h, n)
    h0t = rT[:, :h, :]                                                 # h0^T: (tb, h, n)
    h1t = rT[:, h:, :]                                                 # h1^T: (tb, h, n)

    # z = y1^T (the layer-1 output already in the layer-2 "node on sublanes" layout):
    #   z[b, a, i] = d1[i]*h0[b, i, a] + sum_j A1off[i, j]*h1[b, j, a] + b1[a]
    agg1 = jnp.dot(h1t.reshape(tb * h, n), a1t_ref[...],
                   preferred_element_type=jnp.float32).reshape(tb, h, n)
    z = (d1_ref[...].reshape(1, 1, n) * h0t
         + agg1
         + b1_ref[...].reshape(1, h, 1))                               # (tb, h, n)

    # ---------------- gconv2 via associativity --------------------------------------
    # y2 = [diag(d2)·Z | A2off·Z] @ [[W20],[W21]] + b2, applied on the 16-wide side.
    zt = jnp.swapaxes(z, 1, 2)                                         # (tb, n, h) == y1
    pt = d2_ref[...].reshape(1, 1, h) * zt                             # (diag(d2)·Z)^T
    qt = jnp.dot(zt.reshape(tb * n, h), a2t_ref[...],
                 preferred_element_type=jnp.float32).reshape(tb, n, h) # (A2off·Z)^T
    # [P | Q] with layer-2 nodes on sublanes and the stacked 2n features on lanes.
    lhs = jnp.swapaxes(jnp.concatenate([pt, qt], axis=1), 1, 2)        # (tb, h, 2n)
    y2 = jnp.dot(lhs.reshape(tb * h, 2 * n).astype(jnp.bfloat16), w2_ref[...],
                 preferred_element_type=jnp.float32).reshape(tb, h, dout)

    # final: out.transpose(1,2).transpose(1,2) == out -> just add bias + residual.
    out_ref[...] = (y2 + b2_ref[...].reshape(1, 1, dout) + x).astype(out_ref.dtype)


# --------------------------------------------------------------------------- wrapper
def _softmax_adj(adj, e_dense):
    """PyTorch: logits = -9e15 everywhere, e at adj>0 positions; softmax over dim=1."""
    logits = jnp.where(adj > 0, e_dense, jnp.float32(-9e15))
    return jax.nn.softmax(logits, axis=1)


def res_graph_conv_attention_forward(x, params, joint_features=None,
                                     block_b=256, vmem_limit_bytes=None):
    """Forward of _ResGraphConv_Attention.

    x: (B, N, C).  joint_features: optional (B, C2, N); if given it is transposed and
    concatenated onto x (as in the torch forward) and the concat becomes the residual.
    """
    if joint_features is not None:
        x = jnp.concatenate([jnp.swapaxes(joint_features, 1, 2), x], axis=2)

    adj = params["adj"]
    B, N, Din = x.shape

    # Hoisted, input-independent adjacency softmax (one per SemGraphConv layer).
    eye = jnp.eye(N, dtype=jnp.float32)
    a1 = _softmax_adj(adj, params["gconv1"]["e"])
    a2 = _softmax_adj(adj, params["gconv2"]["e"])
    d1 = jnp.diagonal(a1).reshape(1, N)                    # lane-oriented diag(A1)
    d2 = jnp.diagonal(a2).reshape(1, N)
    a1offT = (a1 * (1.0 - eye)).T                          # A1offT[j, i] = A1off[i, j]
    a2offT = (a2 * (1.0 - eye)).T

    W1, b1 = params["gconv1"]["W"], params["gconv1"]["b"]
    W2, b2 = params["gconv2"]["W"], params["gconv2"]["b"]
    H, Dout = W1.shape[2], W2.shape[2]
    assert H == N, "torch module's shape algebra requires n_nodes == hid_dim // 2"
    assert Dout == Din, "torch module's residual add requires output_dim == input_dim"

    # Fused / stacked weights (bf16 MXU operands, f32 accumulate in-kernel).
    w1cat = jnp.concatenate([W1[0], W1[1]], axis=1).astype(jnp.bfloat16)    # (Din, 2H)
    w2stack = jnp.concatenate([W2[0], W2[1]], axis=0).astype(jnp.bfloat16)  # (2H, Dout)
    b1_col = b1.reshape(H, 1)
    b2_row = b2.reshape(1, Dout)

    # Batch blocking: avoid the extra HBM pad copy when a near-sized divisor exists.
    tb = max(1, min(block_b, B))
    if B % tb:
        for d in range(tb, 0, -1):
            if B % d == 0:
                if 2 * d >= tb:
                    tb = d
                break
    Bp = pl.cdiv(B, tb) * tb
    xk = jnp.pad(x, ((0, Bp - B), (0, 0), (0, 0))) if Bp != B else x
    # TODO(synk): for HBM-bound cases x/out could be carried as bf16 (halves traffic);
    # kept f32 so the residual add and reference check stay exact.

    def const(a):
        return pl.BlockSpec(a.shape, lambda i, nd=a.ndim: (0,) * nd)

    flops = (2 * (Bp * N) * Din * (2 * H)        # layer-1 fused weight matmul
             + 2 * (Bp * H) * N * N              # layer-1 adjacency
             + 2 * (Bp * N) * H * H              # layer-2 adjacency (on the 16-wide side)
             + 2 * (Bp * H) * (2 * N) * Dout)    # layer-2 fused weight matmul
    bytes_accessed = (4 * Bp * N * (Din + Dout)
                      + 2 * (Din * 2 * H + 2 * H * Dout) + 4 * (2 * N * N + 4 * N + Dout))
    cost = pl.CostEstimate(flops=flops, transcendentals=0, bytes_accessed=bytes_accessed)

    cp_kwargs = dict(dimension_semantics=("parallel",))
    if vmem_limit_bytes is not None:
        cp_kwargs["vmem_limit_bytes"] = vmem_limit_bytes

    out = pl.pallas_call(
        _resgraphconv_kernel,
        out_shape=jax.ShapeDtypeStruct((Bp, N, Dout), jnp.float32),
        grid_spec=pltpu.PrefetchScalarGridSpec(
            num_scalar_prefetch=0,
            grid=(Bp // tb,),
            in_specs=[
                pl.BlockSpec((tb, N, Din), lambda i: (i, 0, 0)),   # x (per batch block)
                const(w1cat), const(a1offT), const(d1), const(b1_col),
                const(a2offT), const(d2), const(w2stack), const(b2_row),
            ],
            out_specs=pl.BlockSpec((tb, N, Dout), lambda i: (i, 0, 0)),
        ),
        compiler_params=pltpu.CompilerParams(**cp_kwargs),
        cost_estimate=cost,
    )(xk, w1cat, a1offT, d1, b1_col, a2offT, d2, w2stack, b2_row)
    return out[:B] if Bp != B else out


# --------------------------------------------------------------------------- pure-JAX reference
def _semconv_ref(xin, W, e_dense, b, adj):
    h0 = jnp.einsum("bnf,fo->bno", xin, W[0])
    h1 = jnp.einsum("bnf,fo->bno", xin, W[1])
    A = _softmax_adj(adj, e_dense)
    M = jnp.eye(adj.shape[0], dtype=xin.dtype)
    out = (jnp.einsum("mn,bno->bmo", A * M, h0)
           + jnp.einsum("mn,bno->bmo", A * (1.0 - M), h1))
    return out + b[None, None, :]


def _ref_forward(x, params, joint_features=None):
    if joint_features is not None:
        x = jnp.concatenate([jnp.swapaxes(joint_features, 1, 2), x], axis=2)
    residual = x
    g1, g2, adj = params["gconv1"], params["gconv2"], params["adj"]
    out = jnp.swapaxes(_semconv_ref(x, g1["W"], g1["e"], g1["b"], adj), 1, 2)
    out = jnp.swapaxes(_semconv_ref(out, g2["W"], g2["e"], g2["b"], adj), 1, 2)
    return jnp.swapaxes(out, 1, 2) + residual


# --------------------------------------------------------------------------- init & demo
def init_semconv(key, in_f, out_f, adj):
    kw, kb, ke = jax.random.split(key, 3)
    bound = 1.414 * (6.0 / (in_f + out_f)) ** 0.5          # xavier_uniform, gain=1.414
    W = jax.random.uniform(kw, (2, in_f, out_f), jnp.float32, -bound, bound)
    stdv = 1.0 / (out_f ** 0.5)
    b = jax.random.uniform(kb, (out_f,), jnp.float32, -stdv, stdv)
    # torch inits e to 1.0 at edge positions; random values make the check stronger
    # (forward semantics are identical for any e).
    e = jax.random.uniform(ke, adj.shape, jnp.float32, 0.5, 1.5)
    return dict(W=W, b=b, e=e)


if __name__ == "__main__":
    N = 16          # graph nodes (torch module needs N == hid_dim // 2)
    HID = 32        # hid_dim  -> gconv1 width = 16
    DIN = 128       # input_dim == output_dim (residual add); lane-dense HBM blocks
    B = 6

    key = jax.random.PRNGKey(0)
    kx, k1, k2 = jax.random.split(key, 3)

    # ring graph + self loops
    idx = jnp.arange(N)
    adj = (jnp.zeros((N, N), jnp.float32)
           .at[idx, idx].set(1.0)
           .at[idx, (idx + 1) % N].set(1.0)
           .at[idx, (idx - 1) % N].set(1.0))

    params = {
        "adj": adj,
        "gconv1": init_semconv(k1, DIN, HID // 2, adj),
        "gconv2": init_semconv(k2, HID // 2, DIN, adj),
    }
    x = jax.random.normal(kx, (B, N, DIN), jnp.float32)

    # block_b=4 -> divisor heuristic picks tb=3 (no pad copy), 2 grid steps.
    out = res_graph_conv_attention_forward(x, params, block_b=4)
    jax.block_until_ready(out)
    ref = _ref_forward(x, params)
    assert out.shape == (B, N, DIN)
    err = float(jnp.max(jnp.abs(out - ref)))
    # bf16 MXU operands (f32 accumulate) -> slightly looser tolerance vs the f32 reference.
    assert jnp.allclose(out, ref, atol=3e-2, rtol=3e-2), err

    # ragged batch: B=5 with tb=4 exercises the padding path (padded rows sliced off).
    out5 = res_graph_conv_attention_forward(x[:5], params, block_b=4)
    jax.block_until_ready(out5)
    ref5 = _ref_forward(x[:5], params)
    err5 = float(jnp.max(jnp.abs(out5 - ref5)))
    assert jnp.allclose(out5, ref5, atol=3e-2, rtol=3e-2), err5

    print("KERNEL_OK")
</pallas_src>

<mosaic_0001>
module attributes {stable_mosaic.version = 11 : i64} {
  func.func @_resgraphconv_kernel(%arg0: i32, %arg1: memref<3x16x128xf32, #tpu.memory_space<vmem>>, %arg2: memref<128x32xbf16, #tpu.memory_space<vmem>>, %arg3: memref<16x16xf32, #tpu.memory_space<vmem>>, %arg4: memref<1x16xf32, #tpu.memory_space<vmem>>, %arg5: memref<16x1xf32, #tpu.memory_space<vmem>>, %arg6: memref<16x16xf32, #tpu.memory_space<vmem>>, %arg7: memref<1x16xf32, #tpu.memory_space<vmem>>, %arg8: memref<32x128xbf16, #tpu.memory_space<vmem>>, %arg9: memref<1x128xf32, #tpu.memory_space<vmem>>, %arg10: memref<3x16x128xf32, #tpu.memory_space<vmem>>) attributes {dimension_semantics = [#tpu.dimension_semantics<parallel>], iteration_bounds = array<i64: 2>, scalar_prefetch = 0 : i64, scratch_operands = 0 : i64, tpu.core_type = #tpu.core_type<tc>, window_params = [{transform_indices = @transform_0, window_bounds = array<i64: 3, 16, 128>}, {pipeline_mode = #tpu.pipeline_mode<synchronous>, transform_indices = @transform_1, window_bounds = array<i64: 128, 32>}, {pipeline_mode = #tpu.pipeline_mode<synchronous>, transform_indices = @transform_2, window_bounds = array<i64: 16, 16>}, {pipeline_mode = #tpu.pipeline_mode<synchronous>, transform_indices = @transform_3, window_bounds = array<i64: 1, 16>}, {pipeline_mode = #tpu.pipeline_mode<synchronous>, transform_indices = @transform_4, window_bounds = array<i64: 16, 1>}, {pipeline_mode = #tpu.pipeline_mode<synchronous>, transform_indices = @transform_5, window_bounds = array<i64: 16, 16>}, {pipeline_mode = #tpu.pipeline_mode<synchronous>, transform_indices = @transform_6, window_bounds = array<i64: 1, 16>}, {pipeline_mode = #tpu.pipeline_mode<synchronous>, transform_indices = @transform_7, window_bounds = array<i64: 32, 128>}, {pipeline_mode = #tpu.pipeline_mode<synchronous>, transform_indices = @transform_8, window_bounds = array<i64: 1, 128>}, {transform_indices = @transform_9, window_bounds = array<i64: 3, 16, 128>}]} {
    %c0 = arith.constant 0 : index
    %c0_0 = arith.constant 0 : index
    %c0_1 = arith.constant 0 : index
    %0 = vector.load %arg1[%c0, %c0_0, %c0_1] : memref<3x16x128xf32, #tpu.memory_space<vmem>>, vector<3x16x128xf32>
    %1 = vector.shape_cast %0 : vector<3x16x128xf32> to vector<48x128xf32>
    %2 = arith.truncf %1 : vector<48x128xf32> to vector<48x128xbf16>
    %c0_2 = arith.constant 0 : index
    %c0_3 = arith.constant 0 : index
    %3 = vector.load %arg2[%c0_2, %c0_3] : memref<128x32xbf16, #tpu.memory_space<vmem>>, vector<128x32xbf16>
    %cst = arith.constant dense<0.000000e+00> : vector<48x32xf32>
    %4 = tpu.matmul %2, %3, %cst {dimension_numbers = #tpu.dot_dimension_numbers<[1], [0], [0], [1], [0, 0, 1, 1], [], []>} : vector<48x128xbf16>, vector<128x32xbf16>, vector<48x32xf32> -> vector<48x32xf32>
    %5 = vector.shape_cast %4 : vector<48x32xf32> to vector<3x16x32xf32>
    %6 = tpu.transpose %5, [0, 2, 1] : vector<3x16x32xf32> -> vector<3x32x16xf32>
    %7 = vector.extract_strided_slice %6 {offsets = [0, 0, 0], sizes = [3, 16, 16], strides = [1, 1, 1]} : vector<3x32x16xf32> to vector<3x16x16xf32>
    %8 = vector.extract_strided_slice %6 {offsets = [0, 16, 0], sizes = [3, 16, 16], strides = [1, 1, 1]} : vector<3x32x16xf32> to vector<3x16x16xf32>
    %9 = vector.shape_cast %8 : vector<3x16x16xf32> to vector<48x16xf32>
    %c0_4 = arith.constant 0 : index
    %c0_5 = arith.constant 0 : index
    %10 = vector.load %arg3[%c0_4, %c0_5] : memref<16x16xf32, #tpu.memory_space<vmem>>, vector<16x16xf32>
    %cst_6 = arith.constant dense<0.000000e+00> : vector<48x16xf32>
    %11 = tpu.matmul %9, %10, %cst_6 {dimension_numbers = #tpu.dot_dimension_numbers<[1], [0], [0], [1], [0, 0, 1, 1], [], []>} : vector<48x16xf32>, vector<16x16xf32>, vector<48x16xf32> -> vector<48x16xf32>
    %12 = vector.shape_cast %11 : vector<48x16xf32> to vector<3x16x16xf32>
    %c0_7 = arith.constant 0 : index
    %c0_8 = arith.constant 0 : index
    %13 = vector.load %arg4[%c0_7, %c0_8] : memref<1x16xf32, #tpu.memory_space<vmem>>, vector<1x16xf32>
    %14 = vector.shape_cast %13 : vector<1x16xf32> to vector<1x1x16xf32>
    %15 = vector.broadcast %14 : vector<1x1x16xf32> to vector<3x16x16xf32>
    %16 = arith.mulf %15, %7 : vector<3x16x16xf32>
    %17 = arith.addf %16, %12 : vector<3x16x16xf32>
    %c0_9 = arith.constant 0 : index
    %c0_10 = arith.constant 0 : index
    %18 = vector.load %arg5[%c0_9, %c0_10] : memref<16x1xf32, #tpu.memory_space<vmem>>, vector<16x1xf32>
    %19 = vector.shape_cast %18 : vector<16x1xf32> to vector<1x16x1xf32>
    %20 = vector.broadcast %19 : vector<1x16x1xf32> to vector<3x16x16xf32>
    %21 = arith.addf %17, %20 : vector<3x16x16xf32>
    %22 = tpu.transpose %21, [0, 2, 1] : vector<3x16x16xf32> -> vector<3x16x16xf32>
    %c0_11 = arith.constant 0 : index
    %c0_12 = arith.constant 0 : index
    %23 = vector.load %arg7[%c0_11, %c0_12] : memref<1x16xf32, #tpu.memory_space<vmem>>, vector<1x16xf32>
    %24 = vector.shape_cast %23 : vector<1x16xf32> to vector<1x1x16xf32>
    %25 = vector.broadcast %24 : vector<1x1x16xf32> to vector<3x16x16xf32>
    %26 = arith.mulf %25, %22 : vector<3x16x16xf32>
    %27 = vector.shape_cast %22 : vector<3x16x16xf32> to vector<48x16xf32>
    %c0_13 = arith.constant 0 : index
    %c0_14 = arith.constant 0 : index
    %28 = vector.load %arg6[%c0_13, %c0_14] : memref<16x16xf32, #tpu.memory_space<vmem>>, vector<16x16xf32>
    %cst_15 = arith.constant dense<0.000000e+00> : vector<48x16xf32>
    %29 = tpu.matmul %27, %28, %cst_15 {dimension_numbers = #tpu.dot_dimension_numbers<[1], [0], [0], [1], [0, 0, 1, 1], [], []>} : vector<48x16xf32>, vector<16x16xf32>, vector<48x16xf32> -> vector<48x16xf32>
    %30 = vector.shape_cast %29 : vector<48x16xf32> to vector<3x16x16xf32>
    %31 = tpu.concatenate %26, %30 in 1 : vector<3x16x16xf32>, vector<3x16x16xf32> -> vector<3x32x16xf32>
    %32 = tpu.transpose %31, [0, 2, 1] : vector<3x32x16xf32> -> vector<3x16x32xf32>
    %33 = vector.shape_cast %32 : vector<3x16x32xf32> to vector<48x32xf32>
    %34 = arith.truncf %33 : vector<48x32xf32> to vector<48x32xbf16>
    %c0_16 = arith.constant 0 : index
    %c0_17 = arith.constant 0 : index
    %35 = vector.load %arg8[%c0_16, %c0_17] : memref<32x128xbf16, #tpu.memory_space<vmem>>, vector<32x128xbf16>
    %cst_18 = arith.constant dense<0.000000e+00> : vector<48x128xf32>
    %36 = tpu.matmul %34, %35, %cst_18 {dimension_numbers = #tpu.dot_dimension_numbers<[1], [0], [0], [1], [0, 0, 1, 1], [], []>} : vector<48x32xbf16>, vector<32x128xbf16>, vector<48x128xf32> -> vector<48x128xf32>
    %37 = vector.shape_cast %36 : vector<48x128xf32> to vector<3x16x128xf32>
    %c0_19 = arith.constant 0 : index
    %c0_20 = arith.constant 0 : index
    %38 = vector.load %arg9[%c0_19, %c0_20] : memref<1x128xf32, #tpu.memory_space<vmem>>, vector<1x128xf32>
    %39 = vector.shape_cast %38 : vector<1x128xf32> to vector<1x1x128xf32>
    %40 = vector.broadcast %39 : vector<1x1x128xf32> to vector<3x16x128xf32>
    %41 = arith.addf %37, %40 : vector<3x16x128xf32>
    %42 = arith.addf %41, %0 : vector<3x16x128xf32>
    %c0_21 = arith.constant 0 : index
    %c0_22 = arith.constant 0 : index
    %c0_23 = arith.constant 0 : index
    %43 = vector.load %arg10[%c0_21, %c0_22, %c0_23] : memref<3x16x128xf32, #tpu.memory_space<vmem>>, vector<3x16x128xf32>
    tpu.vector_store %arg10[%c0_21, %c0_22, %c0_23], %42 {strides = array<i32>} : memref<3x16x128xf32, #tpu.memory_space<vmem>>, vector<3x16x128xf32>,
    return
  }
  func.func @transform_0(%arg0: i32) -> (i32, i32, i32) {
    %c0_i32 = arith.constant 0 : i32
    %c0_i32_0 = arith.constant 0 : i32
    %c0_i32_1 = arith.constant 0 : i32
    return %arg0, %c0_i32, %c0_i32_0 : i32, i32, i32
  }
  func.func @transform_1(%arg0: i32) -> (i32, i32) {
    %c0_i32 = arith.constant 0 : i32
    %c0_i32_0 = arith.constant 0 : i32
    %c0_i32_1 = arith.constant 0 : i32
    return %c0_i32, %c0_i32_0 : i32, i32
  }
  func.func @transform_2(%arg0: i32) -> (i32, i32) {
    %c0_i32 = arith.constant 0 : i32
    %c0_i32_0 = arith.constant 0 : i32
    %c0_i32_1 = arith.constant 0 : i32
    return %c0_i32, %c0_i32_0 : i32, i32
  }
  func.func @transform_3(%arg0: i32) -> (i32, i32) {
    %c0_i32 = arith.constant 0 : i32
    %c0_i32_0 = arith.constant 0 : i32
    %c0_i32_1 = arith.constant 0 : i32
    return %c0_i32, %c0_i32_0 : i32, i32
  }
  func.func @transform_4(%arg0: i32) -> (i32, i32) {
    %c0_i32 = arith.constant 0 : i32
    %c0_i32_0 = arith.constant 0 : i32
    %c0_i32_1 = arith.constant 0 : i32
    return %c0_i32, %c0_i32_0 : i32, i32
  }
  func.func @transform_5(%arg0: i32) -> (i32, i32) {
    %c0_i32 = arith.constant 0 : i32
    %c0_i32_0 = arith.constant 0 : i32
    %c0_i32_1 = arith.constant 0 : i32
    return %c0_i32, %c0_i32_0 : i32, i32
  }
  func.func @transform_6(%arg0: i32) -> (i32, i32) {
    %c0_i32 = arith.constant 0 : i32
    %c0_i32_0 = arith.constant 0 : i32
    %c0_i32_1 = arith.constant 0 : i32
    return %c0_i32, %c0_i32_0 : i32, i32
  }
  func.func @transform_7(%arg0: i32) -> (i32, i32) {
    %c0_i32 = arith.constant 0 : i32
    %c0_i32_0 = arith.constant 0 : i32
    %c0_i32_1 = arith.constant 0 : i32
    return %c0_i32, %c0_i32_0 : i32, i32
  }
  func.func @transform_8(%arg0: i32) -> (i32, i32) {
    %c0_i32 = arith.constant 0 : i32
    %c0_i32_0 = arith.constant 0 : i32
    %c0_i32_1 = arith.constant 0 : i32
    return %c0_i32, %c0_i32_0 : i32, i32
  }
  func.func @transform_9(%arg0: i32) -> (i32, i32, i32) {
    %c0_i32 = arith.constant 0 : i32
    %c0_i32_0 = arith.constant 0 : i32
    %c0_i32_1 = arith.constant 0 : i32
    return %arg0, %c0_i32, %c0_i32_0 : i32, i32, i32
  }
}

</mosaic_0001>

<bundles_post_ra>
// kernel: tpu_custom_call.1
= control target key start
LH: loop header
LB: loop body
LE: loop exit
PB: predicated region body
PF: predicated region fallthrough
CT: control target
= control target key end

     0   :  { %s2066_s0 = inlined_call_operand.vmem [shape: f32[6,16,128], index: 0, kind: input, shape index: {}]   ;;  %s2067_s1 = inlined_call_operand.vmem [shape: bf16[128,32], index: 1, kind: input, shape index: {}]   ;;  %s2068_s2 = inlined_call_operand.hbm [shape: f32[16,16], index: 2, kind: input, shape index: {}]   ;;  %s2069_s3 = inlined_call_operand.hbm [shape: f32[1,16], index: 3, kind: input, shape index: {}]   ;;  %s2070_s4 = inlined_call_operand.vmem [shape: f32[16,1], index: 4, kind: input, shape index: {}]   ;;  %s2071_s5 = inlined_call_operand.vmem [shape: f32[16,16], index: 5, kind: input, shape index: {}]   ;;  %s2072_s6 = inlined_call_operand.vmem [shape: f32[1,16], index: 6, kind: input, shape index: {}]   ;;  %s2073_s7 = inlined_call_operand.hbm [shape: bf16[32,128], index: 7, kind: input, shape index: {}]   ;;  %s2074_s8 = inlined_call_operand.vmem [shape: f32[1,128], index: 8, kind: input, shape index: {}]   ;;  %s2075_s9 = inlined_call_operand.hbm [shape: f32[6,16,128], index: 9, kind: output, shape index: {}]  }
   0x1   :  { %2082 = sst [smem:[#allocation15_spill]] %s2069_s3 }
   0x2   :  { %14 = vsyncpa [#allocation3], 0 }
   0x3   :  { %15 = vsyncpa [#allocation6], 0 }
   0x4   :  { %16 = vsyncpa [#allocation4], 0 }
   0x5   :  { %18 = vsyncpa [#allocation4 + $0x1], 0  ;;  %s1767_s30 = smov 0   ;;  %s1769_s10 = smov 0  }
   0x6   :  { %s1771_s11 = smov 0   ;;  %s1773_s12 = smov 0  }
   0x7 LB: > { %2083 = sst [smem:[#allocation12_spill]] %s1698_s11  ;;  %s1788_s13 = sadd.s32 4294967295, %s1702_s12   ;;  %s1702_s12 = sphi %s1773_s12, %s2099_s12   ;;  %s1698_s11 = sphi %s1771_s11, %s2101_s11   ;;  %s1694_s10 = sphi %s1769_s10, %s2103_s10   ;;  %s1690_s30 = sphi %s1767_s30, %s2102_s30  }
   0x8   : > { %s1298_s14 = sadd.s32 4294967294, %s1702_s12   ;;  %s1792_s15 = sadd.s32 1, %s1702_s12  }
   0x9   : > { %2084 = sst [smem:[#allocation13_spill]] %s1792_s15  ;;  %s225_s16 = sadd.s32 1, %s1698_s11 }
   0xa   : > { %s222_s17 = ssub.s32 %s1702_s12, %s1792_s15  ;;  %p235_p0 = scmp.ne.s32.totalorder %s1698_s11, %s1694_s10 }
   0xb   : > { %p223_p1 = scmp.eq.s32.totalorder %s222_s17, 0  ;;  %p236_p2 = scmp.eq.s32.totalorder %s1788_s13, 1 }
   0xc   : > { %p241_p3 = scmp.ne.s32.totalorder %s1694_s10, %s1690_s30  ;;  %p242_p4 = scmp.eq.s32.totalorder %s1298_s14, 1 }
   0xd   : > { %s1803_s18 = scalar_select %p223_p1, %s1698_s11, %s225_s16  }
   0xe   : > { %p1805_p5 = por %p236_p2, %p235_p0  ;;  %p1809_p6 = por %p242_p4, %p241_p3 }
   0xf   : > { %2085 = sst [smem:[#allocation14_spill]] %s1803_s18  ;;  %p1299_p7 = scmp.ge.s32.totalorder %s1702_s12, 1 }
  0x10   : > { %s2086_s19 = scalar_select %p1805_p5, 1, 0 }
  0x11   : > { %s2087_s20 = scalar_select %p1809_p6, 1, 0 }
  0x12   : > { %p249_p8 = scmp.lt.s32.totalorder %s1702_s12, 3  ;;  %p2076_p9 = scmp.eq.s32.totalorder %s1788_s13, 0 }
  0x13   : > { %s1704_s22 = smov [#allocation5]   ;;  %s1705_s24 = smov [#allocation2]  }
  0x14   : > { %p1816_p10 = pnand %p1299_p7, %p249_p8  ;;  %s278_s23 = sshll.u32 %s1704_s22, 4  ;;  %s279_s23 = int_to_ptr.vmem [resolvable:$true] %s278_s23 }
  0x15   : > { %s264_s25 = sshll.u32 %s1705_s24, 4  ;;  %s1706_s27 = smov [#allocation7]   ;;  %s1828_s25 = int_to_ptr.vmem [resolvable:$true] %s264_s25 }
  0x16   : > { %s2088_s21 = scalar_select %p1816_p10, 1, 0 }
  0x17   : > { %p1471_p11 = pneg %p1816_p10  ;;  %s1830_s28 = sshll.u32 %s1706_s27, 4  ;;  %s298_s28 = int_to_ptr.vmem [resolvable:$true] %s1830_s28 }
  0x18   : > { %s2090_s3 = sld [smem:[#allocation15_spill]] }
  0x19   : > { %p1824_p12 = pnand %p2076_p9, %p1471_p11 }
  0x1b   : > { %p1840_p0 = pneg %p1824_p12 }
  0x1e   : > { %s1548_s16 = scalar_lea.hbm %s2090_s3, 16 }
  0x1f   : > { %p1549_p13 = scmp.ne.s32.totalorder %s2090_s3, %s1548_s16  ;;  %p1555_p3 = scmp.lt.u32.totalorder %s1548_s16, %s2090_s3 }
  0x21   : > { %p1551_p1 = pnand %p1840_p0, %p1549_p13 }
  0x23   : > { %p1552_p2 = pneg %p1551_p1 }
  0x25   : > { %p1557_p4 = pnand %p1555_p3, %p1552_p2 }
  0x27   : > { %1560 = shalt.err (!%p1557_p4)
}
  0x28   : > { %s1561_s29 = scalar_lea.vmem %s279_s23, 16  ;;  %s1568_s14 = scalar_lea.vmem %s279_s23, 32 }
  0x29   : > { %p1562_p7 = scmp.ne.s32.totalorder %s279_s23, %s1561_s29  ;;  %p1569_p9 = scmp.lt.s32.totalorder %s279_s23, %s279_s23 }
  0x2a   : > { %p1570_p6 = scmp.lt.s32.totalorder %s1568_s14, %s1561_s29 }
  0x2b   : > { %p1564_p8 = pnand %p1562_p7, %p1840_p0 }
  0x2c   : > { %p1571_p5 = por %p1570_p6, %p1569_p9 }
  0x2d   : > { %p1565_p11 = pneg %p1564_p8 }
  0x2f   : > { %p1572_p10 = pnand %p1571_p5, %p1565_p11 }
  0x31   : > { %1575 = shalt.err (!%p1572_p10)
}
  0x32   : > { %1477 = dma.hbm_to_vmem [thread:$0]  (!%p1824_p12), %s2090_s3, 16, %s279_s23, [#allocation6]  }
  0x33   : > { %s1576_s27 = scalar_lea.hbm %s2068_s2, 256 }
  0x34   : > { %p1577_p13 = scmp.ne.s32.totalorder %s2068_s2, %s1576_s27  ;;  %p1583_p5 = scmp.lt.u32.totalorder %s1576_s27, %s2068_s2 }
  0x36   : > { %p1579_p1 = pnand %p1577_p13, %p1840_p0 }
  0x38   : > { %p1580_p6 = pneg %p1579_p1 }
  0x3a   : > { %p1585_p9 = pnand %p1583_p5, %p1580_p6 }
  0x3c   : > { %1588 = shalt.err (!%p1585_p9)
}
  0x3d   : > { %s1589_s23 = scalar_lea.vmem %s1828_s25, 256  ;;  %p1597_p4 = scmp.lt.s32.totalorder %s1828_s25, %s1828_s25 }
  0x3e   : > { %p1590_p10 = scmp.ne.s32.totalorder %s1828_s25, %s1589_s23  ;;  %p1598_p7 = scmp.lt.s32.totalorder %s1589_s23, %s1589_s23 }
  0x40   : > { %p1592_p2 = pnand %p1590_p10, %p1840_p0  ;;  %p1599_p8 = por %p1598_p7, %p1597_p4 }
  0x42   : > { %p1593_p3 = pneg %p1592_p2 }
  0x44   : > { %p1600_p11 = pnand %p1599_p8, %p1593_p3 }
  0x46   : > { %1603 = shalt.err (!%p1600_p11)
}
  0x47   : > { %s1707_s11 = smov 128   ;;  %s1708_s15 = smov 8  }
  0x48   : > { %1474 = dma.hbm_to_vmem [thread:$0]  (!%p1824_p12), %s2068_s2, 256, %s1828_s25, [#allocation3], %s1707_s11, %s1707_s11, %s1708_s15  }
  0x49   : > { %s1604_s27 = scalar_lea.hbm %s2073_s7, 256 }
  0x4a   : > { %p1605_p13 = scmp.ne.s32.totalorder %s2073_s7, %s1604_s27  ;;  %p1611_p5 = scmp.lt.u32.totalorder %s1604_s27, %s2073_s7 }
  0x4c   : > { %p1607_p1 = pnand %p1605_p13, %p1840_p0 }
  0x4e   : > { %p1608_p6 = pneg %p1607_p1 }
  0x50   : > { %p1613_p9 = pnand %p1611_p5, %p1608_p6 }
  0x52   : > { %1616 = shalt.err (!%p1613_p9)
}
  0x53   : > { %s1617_s17 = scalar_lea.vmem %s298_s28, 256  ;;  %p1625_p4 = scmp.lt.s32.totalorder %s298_s28, %s298_s28 }
  0x54   : > { %p1618_p10 = scmp.ne.s32.totalorder %s298_s28, %s1617_s17  ;;  %p1626_p7 = scmp.lt.s32.totalorder %s1617_s17, %s1617_s17 }
  0x56   : > { %p1620_p2 = pnand %p1618_p10, %p1840_p0  ;;  %p1627_p8 = por %p1626_p7, %p1625_p4 }
  0x58   : > { %p1621_p3 = pneg %p1620_p2 }
  0x5a   : > { %p1628_p11 = pnand %p1627_p8, %p1621_p3 }
  0x5c   : > { %1631 = shalt.err (!%p1628_p11)
}
  0x5d   : > { %s1709_s25 = smov 64   ;;  %s1710_s11 = smov 4  }
  0x5e   : > { %1480 = dma.hbm_to_vmem [thread:$0]  (!%p1824_p12), %s2073_s7, 256, %s298_s28, [#allocation6], %s1709_s25, %s1709_s25, %s1710_s11  }
  0x5f   : > { %p2092_p13 = scmp.ne.s32.totalorder %s2088_s21, 0 }
  0x60   : > { %p2093_p1 = scmp.eq.s32.totalorder (!%p2092_p13), %s1788_s13, 0 }
  0x61   : > { %326 = sbr.rel (%p2092_p13) target bundleno = 1434 (0x59a), region = 56 }
  0x68   : > { %1677 = dma.done.wait (%p2093_p1), [#allocation3], 256   ;;  %p2094_p0 = pmov %p2093_p1 }
  0x6a   : > { %1679 = vsyncadd (%p2094_p0), [#allocation3], 4294967040  ;;  %p2095_p6 = pmov %p2094_p0 }
  0x6b   : > { %p2096_p5 = pmov %p2094_p0 }
  0x6c   : > { %1681 = dma.done.wait (%p2095_p6), [#allocation6], 272  }
  0x6d   : > { %1683 = vsyncadd (%p2096_p5), [#allocation6], 4294967024  ;;  %v1711_v0 = vmov 0.0   ;;  %vm1712_vm0 = vmmov 0   ;;  %v1538_v1 = vld [vmem:[%s2067_s1] sm:$0xff]   ;;  %v1539_v2 = vld [vmem:[%s2067_s1 + $0x8] sm:$0xff]  }
  0x6e   : > { %1378 = vmatprep.subr.bf16.mxu0 %v1711_v0  ;;  %1394 = vmatprep.mubr.msk.bf16.mxu0 %vm1712_vm0, %v1711_v0  ;;  %v1540_v3 = vld [vmem:[%s2067_s1 + $0x10] sm:$0xff]   ;;  %s371_s16 = smul.u32 3, %s1788_s13  ;;  %v1541_v4 = vld [vmem:[%s2067_s1 + $0x18] sm:$0xff]   ;;  %v1542_v5 = vld [vmem:[%s2067_s1 + $0x20] sm:$0xff]   ;;  %v1713_v33 = vmov 0   ;;  %vm608_vm1 = vcmask 130048  }
  0x6f   : > { %1379 = vmatpush3.bf16.msra.mxu0 %v1538_v1  ;;  %v1543_v6 = vld [vmem:[%s2067_s1 + $0x28] sm:$0xff]   ;;  %v1544_v7 = vld [vmem:[%s2067_s1 + $0x30] sm:$0xff]   ;;  %v1545_v8 = vld [vmem:[%s2067_s1 + $0x38] sm:$0xff]   ;;  %vm1098_vm2 = vcmask 261120   ;;  %s368_s3 = sand.u32 1, %s1694_s10   ;;  %s1345_s22 = smul.u32 768, %s1788_s13 }
  0x70   : > { %1380 = vmatprep.subr.bf16.mxu0 %v1711_v0  ;;  %p372_p12 = scmp.lt.s32.totalorder %s371_s16, 5  ;;  %v606_v22 = vld [vmem:[#allocation2] sm:$0xff]  ;;  %v607_v23 = vld [vmem:[#allocation2 + $0x8] sm:$0xff]  ;;  %v1324_v51 = vld [vmem:[#allocation5] ss:$0 sm:$0xff]  ;;  %s1456_s21 = smul.u32 48, %s368_s3 }
  0x71   : > { %v1448_v25 = vpack.c.bf16 %v607_v23, %v606_v22  ;;  %v741_v34 = vld [vmem:[%s2070_s4] sm:$0xff]  ;;  %v742_v35 = vld [vmem:[%s2070_s4 + $0x8] sm:$0xff]  ;;  %s2020_s29 = scalar_lea.hbm %s2075_s9, %s1345_s22  ;;  %s2025_s13 = scalar_lea.sflag [#allocation4], %s368_s3 }
  0x72   : > { %s2105_s16 = smov (!%p372_p12, %s371_s16), 5  ;;  %v868_v48 = vld [vmem:[%s2071_s5] sm:$0xff]  ;;  %v869_v49 = vld [vmem:[%s2071_s5 + $0x8] sm:$0xff]  ;;  %s370_s24 = scalar_lea.vmem [#allocation8], %s1456_s21 }
  0x73   : > { %1381 = vmatpush3.bf16.msra.mxu0 %v1539_v2  ;;  %s1342_s11 = sshll.u32 %s2105_s16, 4  ;;  %1449 = vmatprep.subr.bf16.mxu1 %v1448_v25  ;;  %v1452_v50 = vpack.c.bf16 %v869_v49, %v868_v48  ;;  %s1205_s18 = sshll.u32 %s370_s24, 4  ;;  %s2015_s18 = int_to_ptr.vmem [resolvable:$true] %s1205_s18 }
  0x74   : > { %1382 = vmatprep.subr.bf16.mxu0 %v1711_v0  ;;  %s376_s28 = scalar_lea.vmem %s2066_s0, %s1342_s11  ;;  %1451 = vmatpush3.bf16.msra.mxu1 %v1448_v25  ;;  %s1632_s14 = scalar_lea.vmem %s2015_s18, 768 }
  0x75   : > { %v1945_v9 = vld [vmem:[%s376_s28] sm:$0xff]  ;;  %v1947_v10 = vld [vmem:[%s376_s28 + $0x8] sm:$0xff]  ;;  %v1954_v12 = vld [vmem:[%s376_s28 + $0x10] sm:$0xff]  ;;  %1453 = vmatprep.subr.bf16.mxu1 %v1452_v50  ;;  %p1633_p9 = scmp.ne.s32.totalorder %s2015_s18, %s1632_s14  ;;  %p2097_p10 = scmp.ne.s32.totalorder %s2086_s19, 0 }
  0x76   : > { %v386_v11 = vpack.c.bf16 %v1947_v10, %v1945_v9  ;;  %v1956_v13 = vld [vmem:[%s376_s28 + $0x18] sm:$0xff]  ;;  %v1962_v15 = vld [vmem:[%s376_s28 + $0x20] sm:$0xff]  ;;  %v1964_v16 = vld [vmem:[%s376_s28 + $0x28] sm:$0xff]  ;;  %s1714_s23 = smov [#allocation8]  }
  0x77   : > { %1383 = vmatpush3.bf16.msra.mxu0 %v1540_v3  ;;  %v387_v14 = vpack.c.bf16 %v1956_v13, %v1954_v12  ;;  %v388_v17 = vpack.c.bf16 %v1964_v16, %v1962_v15  ;;  %p1634_p2 = pnand %p1633_p9, %p2097_p10  ;;  %s1636_s17 = sshll.u32 %s1714_s23, 4  ;;  %s1637_s17 = int_to_ptr.vmem [resolvable:$false] %s1636_s17 }
  0x78   : > { %1384 = vmatprep.subr.bf16.mxu0 %v1711_v0  ;;  %s1638_s25 = scalar_lea.vmem %s1637_s17, 1536  ;;  %p1639_p4 = scmp.lt.s32.totalorder %s2015_s18, %s1637_s17 }
  0x79   : > { %p1635_p3 = pneg %p1634_p2  ;;  %p1640_p7 = scmp.lt.s32.totalorder %s1638_s25, %s1632_s14 }
  0x7b   : > { %1385 = vmatpush3.bf16.msra.mxu0 %v1541_v4  ;;  %p1641_p8 = por %p1640_p7, %p1639_p4 }
  0x7c   : > { %1386 = vmatprep.subr.bf16.mxu0 %v1711_v0 }
  0x7d   : > { %p1642_p11 = pnand %p1641_p8, %p1635_p3 }
  0x7f   : > { %1387 = vmatpush3.bf16.msra.mxu0 %v1542_v5 }
  0x80   : > { %1388 = vmatprep.subr.bf16.mxu0 %v1711_v0 }
  0x83   : > { %1389 = vmatpush3.bf16.msra.mxu0 %v1543_v6 }
  0x84   : > { %1390 = vmatprep.subr.bf16.mxu0 %v1711_v0 }
  0x87   : > { %1391 = vmatpush3.bf16.msra.mxu0 %v1544_v7 }
  0x88   : > { %1392 = vmatprep.subr.bf16.mxu0 %v1711_v0 }
  0x8b   : > { %1393 = vmatpush3.bf16.msra.mxu0 %v1545_v8 }
  0x8e   : > { %1395 = vmatmul.mubr.bf16.vlgmr.msra.gmra.mrb[0].mxu0 %v386_v11 }
  0x8f   : > { %1398 = vmatprep.mubr.msk.bf16.mxu0 %vm1712_vm0, %v1711_v0 }
  0x96   : > { %1399 = vmatmul.mubr.bf16.gmra.mrb[4].mxu0 %v387_v14 }
  0x97   : > { %1402 = vmatprep.mubr.msk.bf16.mxu0 %vm1712_vm0, %v1711_v0 }
  0x9e   : > { %1403 = vmatmul.mubr.bf16.gmra.mrb[8].mxu0 %v388_v17 }
 0x161   : > { %v487_v18 = vpop.f32.mrb[0].mxu0 }
 0x162   : > { %510 = vxpose.xlu0.b32.start [1/2] (short) (narrow) %v487_v18, 32  ;;  %v1396_v19 = vpop.f32.mrb[1].mxu0 }
 0x163   : > { %v490_v20 = vpop.f32.mrb[2].mxu0 }
 0x164   : > { %v1397_v21 = vpop.f32.mrb[3].mxu0 }
 0x165   : > { %v1325_v21 = vld [vmem:[%s2072_s6] ss:$0 sm:$0xff] }
 0x166   : > { %511 = vxpose.xlu0.b32.end [2/2] (short) (narrow) %v490_v20, 32 }
 0x169   : > { %v495_v24 = vpop.f32.mrb[4].mxu0 }
 0x16a   : > { %542 = vxpose.xlu1.b32.start [1/2] (short) (narrow) %v495_v24, 32  ;;  %v1400_v26 = vpop.f32.mrb[5].mxu0 }
 0x16b   : > { %v498_v27 = vpop.f32.mrb[6].mxu0 }
 0x16c   : > { %v1401_v28 = vpop.f32.mrb[7].mxu0 }
 0x16e   : > { %543 = vxpose.xlu1.b32.end [2/2] (short) (narrow) %v498_v27, 32 }
 0x171   : > { %v503_v29 = vpop.f32.mrb[8].mxu0 }
 0x172   : > { %574 = vxpose.xlu0.b32.start [1/2] (short) (narrow) %v503_v29, 32  ;;  %v1404_v30 = vpop.f32.mrb[9].mxu0 }
 0x173   : > { %v506_v31 = vpop.f32.mrb[10].mxu0 }
 0x174   : > { %v1405_v32 = vpop.f32.mrb[11].mxu0 }
 0x176   : > { %575 = vxpose.xlu0.b32.end [2/2] (short) (narrow) %v506_v31, 32 }
 0x18c   : > { %1536 = vset.pattern.permute.xlu1 %v1713_v33 }
 0x194   : > { %745 = vperm.xlu1 %1536, %v741_v34   ;;  %v1547_v34 = vld [vmem:[#allocation7 + $0x8] sm:$0xff]  }
 0x19f   : > { %1537 = vset.pattern.permute.xlu0 %v1713_v33  ;;  %v1546_v33 = vld [vmem:[#allocation7] sm:$0xff]  }
 0x1a7   : > { %750 = vperm.xlu0 %1537, %v742_v35  }
 0x1e2   : > { %v526_v36 = vpop.trf.xlu0 }
 0x1e3   : > { %v729_v53 = vmul.f32 %v1324_v51, %v526_v36 }
 0x1e6   : > { %v527_v37 = vpop.trf.xlu0 }
 0x1e7   : > { %v730_v52 = vmul.f32 %v1324_v51, %v527_v37 }
 0x1ea   : > { %v528_v38 = vpop.trf.xlu0  ;;  %v558_v39 = vpop.trf.xlu1 }
 0x1eb   : > { %1410 = vmatprep.mubr.msk.f32.mxu1 %vm608_vm1, %v528_v38  ;;  %v731_v62 = vmul.f32 %v1324_v51, %v558_v39 }
 0x1ee   : > { %v529_v40 = vpop.trf.xlu0  ;;  %v559_v41 = vpop.trf.xlu1 }
 0x1ef   : > { %1411 = vmatmul.mubr.msk.f32.vlgmr.msra.gmra.mrb[0].mxu1 %vm608_vm1, %v529_v40  ;;  %v732_v61 = vmul.f32 %v1324_v51, %v559_v41 }
 0x1f0   : > { %1455 = vmatpush3.bf16.msra.mxu1 %v1452_v50 }
 0x1f1   : > { %1432 = vmatprep.subr.bf16.mxu1 %v1711_v0 }
 0x1f2   : > { %v560_v42 = vpop.trf.xlu1  ;;  %v590_v43 = vpop.trf.xlu0 }
 0x1f3   : > { %1413 = vmatprep.mubr.msk.f32.mxu1 %vm608_vm1, %v560_v42  ;;  %v733_v7 = vmul.f32 %v1324_v51, %v590_v43 }
 0x1f6   : > { %v561_v44 = vpop.trf.xlu1  ;;  %v591_v45 = vpop.trf.xlu0 }
 0x1f7   : > { %1414 = vmatmul.mubr.msk.f32.gmra.mrb[2].mxu1 %vm608_vm1, %v561_v44  ;;  %v734_v6 = vmul.f32 %v1324_v51, %v591_v45  ;;  %v1337_v51 = vld [vmem:[%s2074_s8] ss:$0 sm:$0xff] }
 0x1fa   : > { %v592_v46 = vpop.trf.xlu0 }
 0x1fb   : > { %1416 = vmatprep.mubr.msk.f32.mxu1 %vm608_vm1, %v592_v46 }
 0x1fe   : > { %v593_v47 = vpop.trf.xlu0 }
 0x1ff   : > { %1417 = vmatmul.mubr.msk.f32.gmra.mrb[4].mxu1 %vm608_vm1, %v593_v47 }
 0x213   : > { %v746_v57 = vpop.permute.xlu1 %745 }
 0x226   : > { %v751_v60 = vpop.permute.xlu0 %750 }
 0x2c2   : > { %v1412_v54 = vpop.f32.mrb[0].mxu1 }
 0x2c3   : > { %v736_v55 = vadd.f32 %v1412_v54, %v730_v52  ;;  %v693_v56 = vpop.f32.mrb[1].mxu1 }
 0x2c4   : > { %v735_v58 = vadd.f32 %v729_v53, %v693_v56 }
 0x2c5   : > { %v754_v63 = vadd.f32 %v751_v60, %v736_v55 }
 0x2c6   : > { %v753_v59 = vadd.f32 %v746_v57, %v735_v58 }
 0x2c8   : > { %759 = vxpose.xlu1.b32.start [1/2] (short) (narrow) %v753_v59, 16 }
 0x2ca   : > { %v1415_v1 = vpop.f32.mrb[2].mxu1 }
 0x2cb   : > { %v738_v2 = vadd.f32 %v1415_v1, %v732_v61  ;;  %v703_v3 = vpop.f32.mrb[3].mxu1 }
 0x2cc   : > { %v737_v4 = vadd.f32 %v731_v62, %v703_v3  ;;  %760 = vxpose.xlu1.b32.end [2/2] (short) (narrow) %v754_v63, 16 }
 0x2cd   : > { %v756_v8 = vadd.f32 %v751_v60, %v738_v2 }
 0x2ce   : > { %v755_v5 = vadd.f32 %v746_v57, %v737_v4 }
 0x2d0   : > { %791 = vxpose.xlu0.b32.start [1/2] (short) (narrow) %v755_v5, 16 }
 0x2d2   : > { %v1418_v11 = vpop.f32.mrb[4].mxu1 }
 0x2d3   : > { %v740_v14 = vadd.f32 %v1418_v11, %v734_v6  ;;  %v713_v17 = vpop.f32.mrb[5].mxu1 }
 0x2d4   : > { %v739_v18 = vadd.f32 %v733_v7, %v713_v17  ;;  %792 = vxpose.xlu0.b32.end [2/2] (short) (narrow) %v756_v8, 16 }
 0x2d5   : > { %v758_v20 = vadd.f32 %v751_v60, %v740_v14 }
 0x2d6   : > { %v757_v19 = vadd.f32 %v746_v57, %v739_v18 }
 0x2d8   : > { %823 = vxpose.xlu1.b32.start [1/2] (short) (narrow) %v757_v19, 16 }
 0x2dc   : > { %824 = vxpose.xlu1.b32.end [2/2] (short) (narrow) %v758_v20, 16 }
 0x348   : > { %v775_v22 = vpop.trf.xlu1 }
 0x349   : > { %v862_v23 = vmul.f32 %v1325_v21, %v775_v22  ;;  %1423 = vmatprep.mubr.msk.f32.mxu1 %vm608_vm1, %v775_v22 }
 0x34b   : > { %983 = vxpose.xlu1.b32.start [1/4] (short) (narrow) %v862_v23, 16 }
 0x34c   : > { %v776_v24 = vpop.trf.xlu1 }
 0x34d   : > { %v863_v25 = vmul.f32 %v1325_v21, %v776_v24  ;;  %1424 = vmatmul.mubr.msk.f32.vlgmr.msra.gmra.mrb[6].mxu1 %vm608_vm1, %v776_v24 }
 0x34e   : > { %1433 = vmatpush3.bf16.msra.mxu1 %v1546_v33 }
 0x34f   : > { %984 = vxpose.xlu1.b32.cont [2/4] (short) (narrow) %v863_v25, 16  ;;  %1434 = vmatprep.subr.bf16.mxu1 %v1711_v0 }
 0x350   : > { %v807_v26 = vpop.trf.xlu0 }
 0x351   : > { %v864_v27 = vmul.f32 %v1325_v21, %v807_v26  ;;  %1426 = vmatprep.mubr.msk.f32.mxu1 %vm608_vm1, %v807_v26 }
 0x352   : > { %1435 = vmatpush3.bf16.msra.mxu1 %v1547_v34 }
 0x353   : > { %1015 = vxpose.xlu0.b32.start [1/4] (short) (narrow) %v864_v27, 16 }
 0x354   : > { %v808_v28 = vpop.trf.xlu0 }
 0x355   : > { %v865_v29 = vmul.f32 %v1325_v21, %v808_v28  ;;  %1427 = vmatmul.mubr.msk.f32.gmra.mrb[8].mxu1 %vm608_vm1, %v808_v28 }
 0x357   : > { %1016 = vxpose.xlu0.b32.cont [2/4] (short) (narrow) %v865_v29, 16 }
 0x358   : > { %v839_v30 = vpop.trf.xlu1 }
 0x359   : > { %v866_v31 = vmul.f32 %v1325_v21, %v839_v30  ;;  %1429 = vmatprep.mubr.msk.f32.mxu1 %vm608_vm1, %v839_v30 }
 0x35c   : > { %v840_v32 = vpop.trf.xlu1 }
 0x35d   : > { %1430 = vmatmul.mubr.msk.f32.gmra.mrb[10].mxu1 %vm608_vm1, %v840_v32  ;;  %v867_v39 = vmul.f32 %v1325_v21, %v840_v32 }
 0x35e   : > { %1436 = vmatprep.mubr.msk.bf16.mxu1 %vm1712_vm0, %v1711_v0 }
 0x420   : > { %v1425_v35 = vpop.f32.mrb[6].mxu1 }
 0x421   : > { %v954_v36 = vpop.f32.mrb[7].mxu1 }
 0x422   : > { %985 = vxpose.xlu1.b32.cont [3/4] (short) (narrow) %v954_v36, 16 }
 0x426   : > { %986 = vxpose.xlu1.b32.end [4/4] (short) (narrow) %v1425_v35, 16 }
 0x428   : > { %v1428_v37 = vpop.f32.mrb[8].mxu1 }
 0x429   : > { %v964_v38 = vpop.f32.mrb[9].mxu1 }
 0x42a   : > { %1017 = vxpose.xlu0.b32.cont [3/4] (short) (narrow) %v964_v38, 16  ;;  %1047 = vxpose.xlu1.b32.start [1/4] (short) (narrow) %v866_v31, 16 }
 0x42e   : > { %1018 = vxpose.xlu0.b32.end [4/4] (short) (narrow) %v1428_v37, 16  ;;  %1048 = vxpose.xlu1.b32.cont [2/4] (short) (narrow) %v867_v39, 16 }
 0x430   : > { %v1431_v40 = vpop.f32.mrb[10].mxu1 }
 0x431   : > { %v974_v41 = vpop.f32.mrb[11].mxu1 }
 0x432   : > { %1049 = vxpose.xlu1.b32.cont [3/4] (short) (narrow) %v974_v41, 16 }
 0x436   : > { %1050 = vxpose.xlu1.b32.end [4/4] (short) (narrow) %v1431_v40, 16 }
 0x49a   : > { %v999_v42 = vpop.trf.xlu1 }
 0x49e   : > { %v1000_v43 = vpop.trf.xlu1 }
 0x49f   : > { %v1079_v44 = vpack.c.bf16 %v1000_v43, %v999_v42 }
 0x4a1   : > { %1437 = vmatmul.mubr.msk.bf16.vlgmr.msra.gmra.mrb[12].mxu1 %vm1098_vm2, %v1079_v44 }
 0x4a2   : > { %v1031_v45 = vpop.trf.xlu0  ;;  %1440 = vmatprep.mubr.msk.bf16.mxu1 %vm1712_vm0, %v1711_v0 }
 0x4a6   : > { %v1032_v46 = vpop.trf.xlu0 }
 0x4a7   : > { %v1080_v47 = vpack.c.bf16 %v1032_v46, %v1031_v45 }
 0x4a9   : > { %1441 = vmatmul.mubr.msk.bf16.gmra.mrb[16].mxu1 %vm1098_vm2, %v1080_v47 }
 0x4aa   : > { %v1063_v48 = vpop.trf.xlu1  ;;  %1444 = vmatprep.mubr.msk.bf16.mxu1 %vm1712_vm0, %v1711_v0 }
 0x4ae   : > { %v1064_v49 = vpop.trf.xlu1 }
 0x4af   : > { %v1081_v50 = vpack.c.bf16 %v1064_v49, %v1063_v48 }
 0x4b1   : > { %1445 = vmatmul.mubr.msk.bf16.gmra.mrb[20].mxu1 %vm1098_vm2, %v1081_v50 }
 0x574   : > { %v1142_v52 = vpop.f32.mrb[12].mxu1 }
 0x575   : > { %v1172_v53 = vadd.f32 %v1337_v51, %v1142_v52  ;;  %v1438_v54 = vpop.f32.mrb[13].mxu1 }
 0x576   : > { %v1145_v55 = vpop.f32.mrb[14].mxu1 }
 0x577   : > { %v1178_v56 = vadd.f32 %v1172_v53, %v1945_v9  ;;  %v1173_v57 = vadd.f32 %v1337_v51, %v1145_v55  ;;  %v1439_v58 = vpop.f32.mrb[15].mxu1 }
 0x579   : > { %1184 = vst [vmem:[%s370_s24] sm:$0xff] %v1178_v56  ;;  %v1179_v0 = vadd.f32 %v1173_v57, %v1947_v10 }
 0x57b   : > { %1185 = vst [vmem:[%s370_s24 + $0x8] sm:$0xff] %v1179_v0 }
 0x57c   : > { %v1150_v59 = vpop.f32.mrb[16].mxu1 }
 0x57d   : > { %v1174_v60 = vadd.f32 %v1337_v51, %v1150_v59  ;;  %v1442_v61 = vpop.f32.mrb[17].mxu1 }
 0x57e   : > { %v1153_v62 = vpop.f32.mrb[18].mxu1 }
 0x57f   : > { %v1180_v63 = vadd.f32 %v1174_v60, %v1954_v12  ;;  %v1175_v1 = vadd.f32 %v1337_v51, %v1153_v62  ;;  %v1443_v2 = vpop.f32.mrb[19].mxu1 }
 0x581   : > { %1186 = vst [vmem:[%s370_s24 + $0x10] sm:$0xff] %v1180_v63  ;;  %v1181_v3 = vadd.f32 %v1175_v1, %v1956_v13 }
 0x583   : > { %1187 = vst [vmem:[%s370_s24 + $0x18] sm:$0xff] %v1181_v3 }
 0x584   : > { %v1158_v9 = vpop.f32.mrb[20].mxu1 }
 0x585   : > { %v1176_v4 = vadd.f32 %v1337_v51, %v1158_v9  ;;  %v1446_v10 = vpop.f32.mrb[21].mxu1 }
 0x586   : > { %v1161_v5 = vpop.f32.mrb[22].mxu1 }
 0x587   : > { %v1182_v6 = vadd.f32 %v1176_v4, %v1962_v15  ;;  %v1177_v7 = vadd.f32 %v1337_v51, %v1161_v5  ;;  %v1447_v8 = vpop.f32.mrb[23].mxu1 }
 0x589   : > { %1188 = vst [vmem:[%s370_s24 + $0x20] sm:$0xff] %v1182_v6  ;;  %v1183_v12 = vadd.f32 %v1177_v7, %v1964_v16 }
 0x58b   : > { %1189 = vst [vmem:[%s370_s24 + $0x28] sm:$0xff] %v1183_v12 }
 0x58c   : > { %1645 = shalt.err (!%p1642_p11)
}
 0x58d   : > { %s1646_s11 = scalar_lea.hbm %s2020_s29, 768  ;;  %s1650_s21 = scalar_lea.hbm %s2075_s9, 1536 }
 0x58e   : > { %p1647_p13 = scmp.ne.s32.totalorder %s2020_s29, %s1646_s11  ;;  %p1651_p6 = scmp.lt.u32.totalorder %s2020_s29, %s2075_s9 }
 0x58f   : > { %p1652_p5 = scmp.lt.u32.totalorder %s1650_s21, %s1646_s11  ;;  %p1654_p9 = scmp.lt.u32.totalorder %s1646_s11, %s2020_s29 }
 0x590   : > { %p1648_p1 = pnand %p1647_p13, %p2097_p10 }
 0x591   : > { %p1653_p12 = por %p1652_p5, %p1651_p6 }
 0x592   : > { %p1649_p0 = pneg %p1648_p1 }
 0x593   : > { %p1655_p2 = por %p1654_p9, %p1653_p12 }
 0x595   : > { %p1656_p3 = pnand %p1655_p2, %p1649_p0 }
 0x597   : > { %1659 = shalt.err (!%p1656_p3)
}
 0x598   : > { %s1715_s24 = smov 128   ;;  %s1716_s22 = smov 8  }
 0x599   : > { %1469 = dma.vmem_to_hbm [thread:$0]  (%p2097_p10), %s2015_s18, 768, %s2020_s29, %s2025_s13, %s1715_s24, %s1715_s24, %s1716_s22  }
 0x59a PF: > { %p1491_p4 = scmp.ge.s32.totalorder %s1702_s12, 2  ;;  %s1220_s16 = sand.u32 1, %s1690_s30  }
 0x59b   : > { %p2098_p7 = scmp.ne.s32.totalorder %s2087_s20, 0  ;;  %s1221_s27 = scalar_lea.sflag [#allocation4], %s1220_s16 }
 0x59d   : > { %p1482_p8 = pnand %p1491_p4, %p2098_p7 }
 0x59f   : > { %1685 = dma.done.wait (!%p1482_p8), %s1221_s27, 768  }
 0x5a0   : > { %1687 = vsyncadd (!%p1482_p8), %s1221_s27, 4294966528  ;;  %s2099_s12 = sld [smem:[#allocation13_spill]]  ;;  %s2100_s14 = sld [smem:[#allocation12_spill]] }
 0x5a1   : > { %s2101_s11 = sld [smem:[#allocation14_spill]]  ;;  %s2102_s30 = smov %s1694_s10 }
 0x5a6   : > { %p21_p11 = scmp.ge.s32.totalorder %s2099_s12, 4   ;;  %s2103_s10 = smov %s2100_s14 }
 0x5a8   :  { %23 = sbr.rel (!%p21_p11) target bundleno = 7 (0x7), region = 104 }
 0x5af   :  { %1226 = vsyncpa [#allocation3], 1 }
 0x5b0   :  { %1228 = vsyncpa [#allocation3 + $0x1], 1 }
 0x5b1   :  { %1229 = vsyncpa [#allocation6], 1 }
 0x5b2   :  { %1230 = vsyncpa [#allocation4], 1 }
 0x5b3   :  { %1232 = vsyncpa [#allocation4 + $0x1], 1 }

</bundles_post_ra>
